<compile_context>
chip_gen: v5e
topology: v5e:2x2
jax: 0.10.0
libtpu: 0.0.40
codegen_flags: <defaults>
</compile_context>

<pallas_src>
import functools

import jax
import jax.numpy as jnp
from jax import lax
from jax.experimental import pallas as pl
from jax.experimental.pallas import tpu as pltpu


# ------------------------- Excitation MLP (in-kernel) ------------------------
def _excite(y_c1, w1_ref, w2_ref):
    """y_c1: (C, 1) f32 pooled means, C on sublanes.
    w1_ref: (C, Cr) = W1.T ;  w2_ref: (C, Cr) = W2 (original Linear layout).
    Returns f32 gates (C, 1).  Pure VPU/XLU: broadcasts + tiny reduces, full
    f32 precision, no MXU and no relayout of the C axis."""
    w1 = w1_ref[...].astype(jnp.float32)                               # (C, Cr)
    w2 = w2_ref[...].astype(jnp.float32)                               # (C, Cr)
    h = jnp.maximum(jnp.sum(y_c1 * w1, axis=0, keepdims=True), 0.0)    # (1, Cr)
    logits = jnp.sum(h * w2, axis=-1, keepdims=True)                   # (C, 1)
    return jax.nn.sigmoid(logits)                                      # (C, 1)


# ------------------------------ Fused kernel ---------------------------------
def _fused_se_kernel(x_ref, w1_ref, w2_ref, o_ref):
    """x_ref/o_ref: (1, C, HW) slab of one batch element."""
    xf = x_ref[0].astype(jnp.float32)                     # (C, HW)
    inv_hw = 1.0 / float(xf.shape[-1])
    y = jnp.sum(xf, axis=-1, keepdims=True) * inv_hw      # (C, 1) mean
    gates = _excite(y, w1_ref, w2_ref)                    # (C, 1) f32
    o_ref[0] = (xf * gates).astype(o_ref.dtype)


# ------------------- Fallback pass 1: pool + excitation ----------------------
def _pool_gate_kernel(x_ref, w1_ref, w2_ref, g_ref, sum_sc, *, hw_total, hw_tile):
    """x_ref: (1, C, hw_tile) streamed tile; g_ref: (1, C, 1) f32 gates out;
    sum_sc: (C, 1) f32 running spatial sum (C stays on sublanes)."""
    t = pl.program_id(1)

    @pl.when(t == 0)
    def _():
        sum_sc[...] = jnp.zeros_like(sum_sc)

    xf = x_ref[0].astype(jnp.float32)                     # (C, hw_tile)
    if hw_total % hw_tile != 0:
        # Ragged last tile: zero the padded lanes before reducing.
        lane = lax.broadcasted_iota(jnp.int32, xf.shape, 1)
        xf = jnp.where(t * hw_tile + lane < hw_total, xf, 0.0)
    sum_sc[...] += jnp.sum(xf, axis=-1, keepdims=True)    # (C, 1)

    @pl.when(t == pl.num_programs(1) - 1)
    def _():
        y = sum_sc[...] * (1.0 / float(hw_total))         # (C, 1) mean
        g_ref[0] = _excite(y, w1_ref, w2_ref)             # (C, 1) f32


# ---------------------- Fallback pass 2: broadcast scale ---------------------
def _scale_kernel(g_ref, x_ref, o_ref):
    """g_ref: (1, C, 1) f32 gates; x_ref/o_ref: (1, C, hw_tile) tiles."""
    o_ref[0] = (x_ref[0].astype(jnp.float32) * g_ref[0]).astype(o_ref.dtype)


# --------------------------------- Sizing ------------------------------------
def _vmem_limit_bytes():
    """Scoped-VMEM limit derived from physical VMEM (96 MiB on 128-MiB
    v4/v5e/v6e parts, 48 MiB on 64-MiB v7x parts)."""
    try:
        phys = int(pltpu.get_tpu_info().vmem_capacity_bytes)
    except Exception:
        phys = 64 << 20                      # conservative default
    return min(96 << 20, (phys // 4) * 3)


def _pick_hw_tile(hw, c, itemsize, budget_bytes):
    """Largest lane-dense spatial tile with c*tile*itemsize <= budget.
    Prefers multiple-of-128 exact divisors of hw (no ragged tile); otherwise
    returns a multiple of 128 and the caller masks the ragged last tile."""
    if c * hw * itemsize <= budget_bytes:
        return hw
    max_lanes = max(128, (budget_bytes // (c * itemsize)) // 128 * 128)
    best = None
    t = 128
    while t <= min(hw, max_lanes):
        if hw % t == 0:
            best = t
        t += 128
    return best if best is not None else min(max_lanes, hw)


# --------------------------------- Wrapper -----------------------------------
def se_block(x, w1_t, w2_t):
    """SEBlock forward.  x: (B, C, H, W).
    w1_t: (C, C//r)  = nn.Linear(C, C//r, bias=False).weight.T
    w2_t: (C//r, C)  = nn.Linear(C//r, C, bias=False).weight.T
    """
    B, C, H, W = x.shape
    Cr = w1_t.shape[1]
    HW = H * W
    itemsize = jnp.dtype(x.dtype).itemsize
    xr = x.reshape(B, C, HW)

    # Kernels keep C on sublanes, so both weights are laid out (C, Cr):
    #   w1_k[c, j] = W1.T[c, j]     w2_k[c, j] = W2[c, j]  (= w2_t.T)
    w1_k = w1_t.astype(jnp.float32)
    w2_k = w2_t.T.astype(jnp.float32)
    w_bytes = (w1_k.size + w2_k.size) * 4

    vmem_limit = _vmem_limit_bytes()

    # Fused kernel holds 2 in + 2 out slab buffers plus ~2 f32 slabs of
    # in-kernel temporaries.
    slab_bytes = C * HW * itemsize
    fused_need = 4 * slab_bytes + 2 * C * HW * 4 + w_bytes + (2 << 20)

    if fused_need <= vmem_limit:
        # -------- Fused path: x read once, written once, one launch --------
        out = pl.pallas_call(
            _fused_se_kernel,
            out_shape=jax.ShapeDtypeStruct((B, C, HW), x.dtype),
            grid=(B,),
            in_specs=[
                pl.BlockSpec((1, C, HW), lambda b: (b, 0, 0)),
                pl.BlockSpec((C, Cr), lambda b: (0, 0)),
                pl.BlockSpec((C, Cr), lambda b: (0, 0)),
            ],
            out_specs=pl.BlockSpec((1, C, HW), lambda b: (b, 0, 0)),
            compiler_params=pltpu.CompilerParams(
                dimension_semantics=("parallel",),
                vmem_limit_bytes=vmem_limit,
            ),
            cost_estimate=pl.CostEstimate(
                flops=2 * B * C * HW + 4 * B * C * Cr,
                transcendentals=B * C,
                bytes_accessed=2 * B * C * HW * itemsize + w_bytes,
            ),
        )(xr, w1_k, w2_k)
        return out.reshape(B, C, H, W)

    # -------- Fallback: two streaming passes for very large slabs --------
    headroom = 6 << 20
    hw_t1 = _pick_hw_tile(HW, C, itemsize, max(1 << 20, (vmem_limit - headroom) // 3))
    hw_t2 = _pick_hw_tile(HW, C, itemsize, max(1 << 20, (vmem_limit - headroom) // 6))
    n_t1 = pl.cdiv(HW, hw_t1)
    n_t2 = pl.cdiv(HW, hw_t2)

    # Pass 1: pooled means + excitation MLP fused; emits f32 gates (B, C, 1).
    # NOTE: on v7x with very small B one TensorCore idles here (spatial axis
    # is "arbitrary"); a 2-slot partial-sum split would recover it.
    gates = pl.pallas_call(
        functools.partial(_pool_gate_kernel, hw_total=HW, hw_tile=hw_t1),
        out_shape=jax.ShapeDtypeStruct((B, C, 1), jnp.float32),
        grid=(B, n_t1),
        in_specs=[
            pl.BlockSpec((1, C, hw_t1), lambda b, t: (b, 0, t)),
            pl.BlockSpec((C, Cr), lambda b, t: (0, 0)),
            pl.BlockSpec((C, Cr), lambda b, t: (0, 0)),
        ],
        out_specs=pl.BlockSpec((1, C, 1), lambda b, t: (b, 0, 0)),
        scratch_shapes=[pltpu.VMEM((C, 1), jnp.float32)],
        compiler_params=pltpu.CompilerParams(
            dimension_semantics=("parallel", "arbitrary"),
            vmem_limit_bytes=vmem_limit,
        ),
        cost_estimate=pl.CostEstimate(
            flops=B * C * HW + 4 * B * C * Cr,
            transcendentals=B * C,
            bytes_accessed=B * C * HW * itemsize + B * C * 4 + w_bytes,
        ),
    )(xr, w1_k, w2_k)

    # Pass 2: out = x * gates, streamed with lane-dense tiles.
    out = pl.pallas_call(
        _scale_kernel,
        out_shape=jax.ShapeDtypeStruct((B, C, HW), x.dtype),
        grid=(B, n_t2),
        in_specs=[
            pl.BlockSpec((1, C, 1), lambda b, t: (b, 0, 0)),
            pl.BlockSpec((1, C, hw_t2), lambda b, t: (b, 0, t)),
        ],
        out_specs=pl.BlockSpec((1, C, hw_t2), lambda b, t: (b, 0, t)),
        compiler_params=pltpu.CompilerParams(
            dimension_semantics=("parallel", "parallel"),
            vmem_limit_bytes=vmem_limit,
        ),
        cost_estimate=pl.CostEstimate(
            flops=B * C * HW,
            transcendentals=0,
            bytes_accessed=2 * B * C * HW * itemsize + B * C * 4,
        ),
    )(gates, xr)
    return out.reshape(B, C, H, W)


# -------------------------------- Reference ----------------------------------
def reference_se_block(x, w1_t, w2_t):
    """Pure-JAX reference matching the PyTorch module (full-f32 matmuls)."""
    y = jnp.mean(x.astype(jnp.float32), axis=(2, 3))
    h = jnp.maximum(
        jnp.dot(y, w1_t.astype(jnp.float32), precision=lax.Precision.HIGHEST), 0.0)
    s = jax.nn.sigmoid(
        jnp.dot(h, w2_t.astype(jnp.float32), precision=lax.Precision.HIGHEST))
    return x * s[:, :, None, None].astype(x.dtype)


if __name__ == "__main__":
    # SEBlock(channel=32, reduction=16): Linear(32 -> 2) and Linear(2 -> 32).
    B, C, H, W = 2, 32, 16, 16
    reduction = 16
    Cr = C // reduction

    key = jax.random.PRNGKey(0)
    kx, k1, k2 = jax.random.split(key, 3)

    x = jax.random.normal(kx, (B, C, H, W), dtype=jnp.float32)
    # nn.Linear(C, C//r, bias=False).weight has shape (C//r, C); we store the
    # transposes so the excitation computes y @ W1.T as y @ w1_t.
    w1_t = jax.random.normal(k1, (C, Cr), dtype=jnp.float32) * 0.1
    w2_t = jax.random.normal(k2, (Cr, C), dtype=jnp.float32) * 0.1

    se_fn = jax.jit(se_block)
    out = jax.block_until_ready(se_fn(x, w1_t, w2_t))

    ref = reference_se_block(x, w1_t, w2_t)
    assert out.shape == (B, C, H, W)
    assert jnp.allclose(out, ref, atol=1e-5, rtol=1e-5), float(
        jnp.max(jnp.abs(out - ref)))

    print("KERNEL_OK")
</pallas_src>

<mosaic_0001>
module attributes {stable_mosaic.version = 11 : i64} {
  func.func @_fused_se_kernel(%arg0: i32, %arg1: memref<1x32x256xf32, #tpu.memory_space<vmem>>, %arg2: memref<32x2xf32, #tpu.memory_space<vmem>>, %arg3: memref<32x2xf32, #tpu.memory_space<vmem>>, %arg4: memref<1x32x256xf32, #tpu.memory_space<vmem>>) attributes {dimension_semantics = [#tpu.dimension_semantics<parallel>], iteration_bounds = array<i64: 2>, scalar_prefetch = 0 : i64, scratch_operands = 0 : i64, tpu.core_type = #tpu.core_type<tc>, window_params = [{transform_indices = @transform_0, window_bounds = array<i64: 1, 32, 256>}, {pipeline_mode = #tpu.pipeline_mode<synchronous>, transform_indices = @transform_1, window_bounds = array<i64: 32, 2>}, {pipeline_mode = #tpu.pipeline_mode<synchronous>, transform_indices = @transform_2, window_bounds = array<i64: 32, 2>}, {transform_indices = @transform_3, window_bounds = array<i64: 1, 32, 256>}]} {
    %c0 = arith.constant 0 : index
    %c0_0 = arith.constant 0 : index
    %c0_1 = arith.constant 0 : index
    %0 = vector.load %arg1[%c0, %c0_0, %c0_1] : memref<1x32x256xf32, #tpu.memory_space<vmem>>, vector<1x32x256xf32>
    %1 = vector.shape_cast %0 : vector<1x32x256xf32> to vector<32x256xf32>
    %cst = arith.constant dense<0.000000e+00> : vector<32xf32>
    %2 = vector.multi_reduction <add>, %1, %cst [1] : vector<32x256xf32> to vector<32xf32>
    %3 = vector.shape_cast %2 : vector<32xf32> to vector<32x1xf32>
    %cst_2 = arith.constant 3.906250e-03 : f32
    %4 = vector.broadcast %cst_2 : f32 to vector<32x1xf32>
    %5 = arith.mulf %3, %4 : vector<32x1xf32>
    %c0_3 = arith.constant 0 : index
    %c0_4 = arith.constant 0 : index
    %6 = vector.load %arg2[%c0_3, %c0_4] : memref<32x2xf32, #tpu.memory_space<vmem>>, vector<32x2xf32>
    %c0_5 = arith.constant 0 : index
    %c0_6 = arith.constant 0 : index
    %7 = vector.load %arg3[%c0_5, %c0_6] : memref<32x2xf32, #tpu.memory_space<vmem>>, vector<32x2xf32>
    %8 = vector.broadcast %5 : vector<32x1xf32> to vector<32x2xf32>
    %9 = arith.mulf %8, %6 : vector<32x2xf32>
    %cst_7 = arith.constant dense<0.000000e+00> : vector<2xf32>
    %10 = vector.multi_reduction <add>, %9, %cst_7 [0] : vector<32x2xf32> to vector<2xf32>
    %11 = vector.shape_cast %10 : vector<2xf32> to vector<1x2xf32>
    %cst_8 = arith.constant 0.000000e+00 : f32
    %12 = vector.broadcast %cst_8 : f32 to vector<1x2xf32>
    %13 = arith.maximumf %11, %12 : vector<1x2xf32>
    %14 = vector.broadcast %13 : vector<1x2xf32> to vector<32x2xf32>
    %15 = arith.mulf %14, %7 : vector<32x2xf32>
    %cst_9 = arith.constant dense<0.000000e+00> : vector<32xf32>
    %16 = vector.multi_reduction <add>, %15, %cst_9 [1] : vector<32x2xf32> to vector<32xf32>
    %17 = vector.shape_cast %16 : vector<32xf32> to vector<32x1xf32>
    %18 = arith.negf %17 : vector<32x1xf32>
    %19 = math.exp %18 : vector<32x1xf32>
    %cst_10 = arith.constant 1.000000e+00 : f32
    %20 = vector.broadcast %cst_10 : f32 to vector<32x1xf32>
    %21 = arith.addf %20, %19 : vector<32x1xf32>
    %22 = arith.divf %20, %21 : vector<32x1xf32>
    %23 = vector.broadcast %22 : vector<32x1xf32> to vector<32x256xf32>
    %24 = arith.mulf %1, %23 : vector<32x256xf32>
    %c0_11 = arith.constant 0 : index
    %c0_12 = arith.constant 0 : index
    %c0_13 = arith.constant 0 : index
    %25 = vector.load %arg4[%c0_11, %c0_12, %c0_13] : memref<1x32x256xf32, #tpu.memory_space<vmem>>, vector<1x32x256xf32>
    %26 = vector.shape_cast %25 : vector<1x32x256xf32> to vector<32x256xf32>
    %27 = vector.shape_cast %24 : vector<32x256xf32> to vector<1x32x256xf32>
    tpu.vector_store %arg4[%c0_11, %c0_12, %c0_13], %27 {strides = array<i32>} : memref<1x32x256xf32, #tpu.memory_space<vmem>>, vector<1x32x256xf32>,
    return
  }
  func.func @transform_0(%arg0: i32) -> (i32, i32, i32) {
    %c0_i32 = arith.constant 0 : i32
    %c0_i32_0 = arith.constant 0 : i32
    %c0_i32_1 = arith.constant 0 : i32
    return %arg0, %c0_i32, %c0_i32_0 : i32, i32, i32
  }
  func.func @transform_1(%arg0: i32) -> (i32, i32) {
    %c0_i32 = arith.constant 0 : i32
    %c0_i32_0 = arith.constant 0 : i32
    %c0_i32_1 = arith.constant 0 : i32
    return %c0_i32, %c0_i32_0 : i32, i32
  }
  func.func @transform_2(%arg0: i32) -> (i32, i32) {
    %c0_i32 = arith.constant 0 : i32
    %c0_i32_0 = arith.constant 0 : i32
    %c0_i32_1 = arith.constant 0 : i32
    return %c0_i32, %c0_i32_0 : i32, i32
  }
  func.func @transform_3(%arg0: i32) -> (i32, i32, i32) {
    %c0_i32 = arith.constant 0 : i32
    %c0_i32_0 = arith.constant 0 : i32
    %c0_i32_1 = arith.constant 0 : i32
    return %arg0, %c0_i32, %c0_i32_0 : i32, i32, i32
  }
}

</mosaic_0001>

<bundles_post_ra>
// kernel: se_block.1
= control target key start
LH: loop header
LB: loop body
LE: loop exit
PB: predicated region body
PF: predicated region fallthrough
CT: control target
= control target key end

     0   :  { %s454_s12 = smov 0   ;;  %s559_s0 = inlined_call_operand.vmem [shape: f32[2,32,256], index: 0, kind: input, shape index: {}]   ;;  %s560_s1 = inlined_call_operand.vmem [shape: f32[32,2], index: 1, kind: input, shape index: {}]   ;;  %s561_s2 = inlined_call_operand.vmem [shape: f32[32,2], index: 2, kind: input, shape index: {}]   ;;  %s562_s3 = inlined_call_operand.vmem [shape: f32[2,32,256], index: 3, kind: output, shape index: {}]  }
   0x1 LB: > { %s385_s13 = sadd.s32 4294967295, %s432_s12   ;;  %p389_p0 = scmp.ge.s32.totalorder %s432_s12, 1  ;;  %s432_s12 = sphi %s454_s12, %s13_s12  }
   0x2   : > { %p137_p1 = scmp.lt.s32.totalorder %s432_s12, 3 }
   0x4   : > { %p138_p2 = pnand %p389_p0, %p137_p1 }
   0x5   : > { %p161_p3 = scmp.lt.s32.totalorder (!%p138_p2), %s385_s13, 1 }
   0x6   : > { %141 = sbr.rel (%p138_p2) target bundleno = 328 (0x148), region = 32 }
   0xb   : > { %s564_s13 = smov (!%p161_p3, %s385_s13), 1  ;;  %v195_v15 = vld [vmem:[%s560_s1] sm:$0xff]  ;;  %v197_v17 = vld [vmem:[%s560_s1 + $0x10] sm:$0xff]  ;;  %v196_v18 = vld [vmem:[%s560_s1 + $0x8] sm:$0xff]  ;;  %vm207_vm0 = vcmask 15360  }
   0xc   : > { %s400_s14 = sshll.u32 %s564_s13, 6  ;;  %v198_v22 = vld [vmem:[%s560_s1 + $0x18] sm:$0xff]  ;;  %v201_v42 = vld [vmem:[%s561_s2 + $0x10] sm:$0xff]  ;;  %v199_v43 = vld [vmem:[%s561_s2] sm:$0xff] }
   0xd   : > { %s165_s17 = scalar_lea.vmem %s559_s0, %s400_s14  ;;  %v202_v41 = vld [vmem:[%s561_s2 + $0x18] sm:$0xff]  ;;  %v200_v51 = vld [vmem:[%s561_s2 + $0x8] sm:$0xff]  ;;  %s534_s9 = scalar_lea.vmem %s562_s3, %s400_s14 }
   0xe   : > { %v470_v0 = vld [vmem:[%s165_s17] sm:$0xff]  ;;  %v472_v1 = vld [vmem:[%s165_s17 + $0x8] sm:$0xff]  ;;  %v482_v6 = vld [vmem:[%s165_s17 + $0x10] sm:$0xff] }
   0xf   : > { %v474_v2 = vld [vmem:[%s165_s17 + $0x20] sm:$0xff]  ;;  %v179_v3 = vadd.f32 %v472_v1, %v470_v0  ;;  %v478_v4 = vld [vmem:[%s165_s17 + $0x28] sm:$0xff]  ;;  %v484_v7 = vld [vmem:[%s165_s17 + $0x18] sm:$0xff] }
  0x10   : > { %v185_v5 = vadd.f32 %v478_v4, %v474_v2  ;;  %v486_v8 = vld [vmem:[%s165_s17 + $0x30] sm:$0xff]  ;;  %v488_v9 = vld [vmem:[%s165_s17 + $0x38] sm:$0xff]  ;;  %v182_v10 = vadd.f32 %v484_v7, %v482_v6 }
  0x11   : > { %180 = vadd.xlane.f32.xlu0 %v179_v3  ;;  %v188_v11 = vadd.f32 %v488_v9, %v486_v8 }
  0x12   : > { %186 = vadd.xlane.f32.xlu1 %v185_v5 }
  0x19   : > { %183 = vadd.xlane.f32.xlu0 %v182_v10 }
  0x1a   : > { %189 = vadd.xlane.f32.xlu1 %v188_v11 }
  0x84   : > { %v181_v12 = vpop.xlane.xlu0 %180 }
  0x85   : > { %v187_v13 = vpop.xlane.xlu1 %186  ;;  %v191_v14 = vmul.f32 0.00390625, %v181_v12 }
  0x86   : > { %v193_v16 = vmul.f32 0.00390625, %v187_v13 }
  0x87   : > { %v203_v20 = vmul.f32 %v195_v15, %v191_v14 }
  0x88   : > { %v205_v25 = vmul.f32 %v197_v17, %v193_v16 }
  0x89   : > { %v208_v28 = vsel %vm207_vm0, %v203_v20, 0.0 }
  0x8a   : > { %v211_v31 = vsel %vm207_vm0, %v205_v25, 0.0 }
  0x8c   : > { %v184_v19 = vpop.xlane.xlu0 %183 }
  0x8d   : > { %v192_v21 = vmul.f32 0.00390625, %v184_v19  ;;  %v190_v23 = vpop.xlane.xlu1 %189 }
  0x8e   : > { %v194_v24 = vmul.f32 0.00390625, %v190_v23 }
  0x8f   : > { %v204_v26 = vmul.f32 %v196_v18, %v192_v21 }
  0x90   : > { %v206_v27 = vmul.f32 %v198_v22, %v194_v24 }
  0x91   : > { %v209_v29 = vsel %vm207_vm0, %v204_v26, 0.0 }
  0x92   : > { %v210_v30 = vadd.f32 %v209_v29, %v208_v28  ;;  %v213_v32 = vsel %vm207_vm0, %v206_v27, 0.0 }
  0x94   : > { %v212_v33 = vadd.f32 %v211_v31, %v210_v30 }
  0x96   : > { %v214_v34 = vadd.f32 %v213_v32, %v212_v33 }
  0x98   : > { %v215_v35 = vrot.slane %v214_v34, 4 }
  0x9a   : > { %v216_v36 = vadd.f32 %v215_v35, %v214_v34 }
  0x9c   : > { %v217_v37 = vrot.slane %v216_v36, 2 }
  0x9e   : > { %v218_v38 = vadd.f32 %v217_v37, %v216_v36 }
  0xa0   : > { %v219_v39 = vrot.slane %v218_v38, 1 }
  0xa2   : > { %v220_v40 = vadd.f32 %v219_v39, %v218_v38 }
  0xa4   : > { %v221_v44 = vmax.f32 %v220_v40, 0.0 }
  0xa6   : > { %v225_v45 = vmul.f32 %v221_v44, %v202_v41  ;;  %v224_v46 = vmul.f32 %v221_v44, %v201_v42  ;;  %v222_v47 = vmul.f32 %v221_v44, %v199_v43  ;;  %v223_v52 = vmul.f32 %v221_v44, %v200_v51 }
  0xa8   : > { %v235_v48 = vsel %vm207_vm0, %v225_v45, 0.0  ;;  %v232_v49 = vsel %vm207_vm0, %v224_v46, 0.0  ;;  %v226_v50 = vsel %vm207_vm0, %v222_v47, 0.0  ;;  %v229_v53 = vsel %vm207_vm0, %v223_v52, 0.0 }
  0xa9   : > { %236 = vadd.xlane.f32.xlu1 %v235_v48  ;;  %233 = vadd.xlane.f32.xlu0 %v232_v49 }
  0xaa   : > { %227 = vadd.xlane.f32.xlu2 %v226_v50 }
  0xb2   : > { %230 = vadd.xlane.f32.xlu2 %v229_v53 }
 0x11c   : > { %v237_v54 = vpop.xlane.xlu1 %236  ;;  %v234_v55 = vpop.xlane.xlu0 %233 }
 0x11d   : > { %v397_v56 = vmul.f32 -1.442695, %v237_v54  ;;  %v396_v57 = vmul.f32 -1.442695, %v234_v55  ;;  %v228_v58 = vpop.xlane.xlu2 %227 }
 0x11e   : > { %v394_v59 = vmul.f32 -1.442695, %v228_v58 }
 0x11f   : > { %410 = vpow2.f32 %v397_v56 }
 0x120   : > { %412 = vpow2.f32 %v396_v57 }
 0x121   : > { %414 = vpow2.f32 %v394_v59 }
 0x125   : > { %v411_v60 = vpop.eup %410  ;;  %v231_v61 = vpop.xlane.xlu2 %230 }
 0x126   : > { %v413_v62 = vpop.eup %412  ;;  %v253_v63 = vadd.f32 1.0, %v411_v60  ;;  %v395_v3 = vmul.f32 -1.442695, %v231_v61 }
 0x127   : > { %v415_v5 = vpop.eup %414  ;;  %v252_v10 = vadd.f32 1.0, %v413_v62 }
 0x128   : > { %416 = vrcp.f32 %v253_v63  ;;  %v250_v11 = vadd.f32 1.0, %v415_v5  ;;  %v308_v18 = vand.u32 2147483647, %v253_v63  ;;  %v310_v21 = vand.u32 2147483648, %v253_v63 }
 0x129   : > { %418 = vrcp.f32 %v252_v10  ;;  %v295_v23 = vand.u32 2147483648, %v252_v10  ;;  %vm304_vm2 = vweird.f32 %v253_v63  ;;  %v293_v27 = vand.u32 2147483647, %v252_v10 }
 0x12a   : > { %420 = vpow2.f32 %v395_v3  ;;  %vm309_vm4 = vcmp.eq.f32.partialorder %v308_v18, 8.507059e+37  ;;  %vm289_vm5 = vweird.f32 %v252_v10  ;;  %v311_v30 = vor.u32 1.1754944e-38, %v310_v21 }
 0x12b   : > { %422 = vrcp.f32 %v250_v11  ;;  %v296_v32 = vor.u32 1.1754944e-38, %v295_v23  ;;  %v265_v33 = vand.u32 2147483648, %v250_v11  ;;  %v263_v36 = vand.u32 2147483647, %v250_v11 }
 0x12c   : > { %vm294_vm9 = vcmp.eq.f32.partialorder %v293_v27, 8.507059e+37  ;;  %vm259_vm10 = vweird.f32 %v250_v11 }
 0x12d   : > { %v266_v46 = vor.u32 1.1754944e-38, %v265_v33  ;;  %vm264_vm12 = vcmp.eq.f32.partialorder %v263_v36, 8.507059e+37 }
 0x12e   : > { %v417_v12 = vpop.eup %416 }
 0x12f   : > { %v419_v13 = vpop.eup %418  ;;  %v300_v14 = vmul.f32 %v417_v12, %v253_v63  ;;  %vm305_vm1 = vweird.f32 %v417_v12 }
 0x130   : > { %v421_v15 = vpop.eup %420  ;;  %v285_v16 = vmul.f32 %v419_v13, %v252_v10  ;;  %vm290_vm3 = vweird.f32 %v419_v13  ;;  %vm306_vm6 = vmor %vm304_vm2, %vm305_vm1 }
 0x131   : > { %v301_v17 = vsub.f32 1.0, %v300_v14  ;;  %v526_v19 = vadd.f32 1.0, %v421_v15  ;;  %v423_v20 = vpop.eup %422  ;;  %vm291_vm7 = vmor %vm289_vm5, %vm290_vm3 }
 0x132   : > { %v286_v22 = vsub.f32 1.0, %v285_v16  ;;  %v255_v25 = vmul.f32 %v423_v20, %v250_v11  ;;  %vm260_vm8 = vweird.f32 %v423_v20 }
 0x133   : > { %v302_v24 = vmul.f32 %v417_v12, %v301_v17  ;;  %424 = vrcp.f32 %v526_v19  ;;  %vm261_vm11 = vmor %vm259_vm10, %vm260_vm8  ;;  %v278_v51 = vand.u32 2147483647, %v526_v19  ;;  %vm274_vm14 = vweird.f32 %v526_v19 }
 0x134   : > { %v287_v26 = vmul.f32 %v419_v13, %v286_v22  ;;  %v256_v29 = vsub.f32 1.0, %v255_v25 }
 0x135   : > { %v303_v28 = vadd.f32 %v417_v12, %v302_v24  ;;  %vm279_vm0 = vcmp.eq.f32.partialorder %v278_v51, 8.507059e+37 }
 0x136   : > { %v288_v31 = vadd.f32 %v419_v13, %v287_v26  ;;  %v257_v35 = vmul.f32 %v423_v20, %v256_v29 }
 0x137   : > { %v307_v34 = vsel %vm306_vm6, %v417_v12, %v303_v28 }
 0x138   : > { %v312_v37 = vsel %vm309_vm4, %v311_v30, %v307_v34  ;;  %v292_v38 = vsel %vm291_vm7, %v419_v13, %v288_v31  ;;  %v258_v43 = vadd.f32 %v423_v20, %v257_v35 }
 0x139   : > { %v425_v39 = vpop.eup %424  ;;  %v320_v40 = vmul.f32 %v312_v37, %v486_v8  ;;  %v321_v41 = vmul.f32 %v312_v37, %v488_v9  ;;  %v297_v42 = vsel %vm294_vm9, %v296_v32, %v292_v38 }
 0x13a   : > { %v318_v44 = vmul.f32 %v297_v42, %v474_v2  ;;  %v319_v45 = vmul.f32 %v297_v42, %v478_v4  ;;  %v270_v47 = vmul.f32 %v425_v39, %v526_v19  ;;  %v262_v48 = vsel %vm261_vm11, %v423_v20, %v258_v43 }
 0x13b   : > { %328 = vst [vmem:[%s534_s9 + $0x30] sm:$0xff] %v320_v40  ;;  %v267_v8 = vsel %vm264_vm12, %v266_v46, %v262_v48  ;;  %v280_v2 = vand.u32 2147483648, %v526_v19  ;;  %vm275_vm13 = vweird.f32 %v425_v39 }
 0x13c   : > { %329 = vst [vmem:[%s534_s9 + $0x38] sm:$0xff] %v321_v41  ;;  %v271_v49 = vsub.f32 1.0, %v270_v47  ;;  %v314_v9 = vmul.f32 %v267_v8, %v470_v0  ;;  %v315_v50 = vmul.f32 %v267_v8, %v472_v1  ;;  %vm276_vm15 = vmor %vm274_vm14, %vm275_vm13 }
 0x13d   : > { %326 = vst [vmem:[%s534_s9 + $0x20] sm:$0xff] %v318_v44  ;;  %v281_v53 = vor.u32 1.1754944e-38, %v280_v2 }
 0x13e   : > { %327 = vst [vmem:[%s534_s9 + $0x28] sm:$0xff] %v319_v45  ;;  %v272_v4 = vmul.f32 %v425_v39, %v271_v49 }
 0x13f   : > { %322 = vst [vmem:[%s534_s9] sm:$0xff] %v314_v9 }
 0x140   : > { %323 = vst [vmem:[%s534_s9 + $0x8] sm:$0xff] %v315_v50  ;;  %v273_v52 = vadd.f32 %v425_v39, %v272_v4 }
 0x142   : > { %v277_v54 = vsel %vm276_vm15, %v425_v39, %v273_v52 }
 0x143   : > { %v282_v0 = vsel %vm279_vm0, %v281_v53, %v277_v54 }
 0x144   : > { %v316_v1 = vmul.f32 %v282_v0, %v482_v6  ;;  %v317_v55 = vmul.f32 %v282_v0, %v484_v7 }
 0x146   : > { %324 = vst [vmem:[%s534_s9 + $0x10] sm:$0xff] %v316_v1 }
 0x147   : > { %325 = vst [vmem:[%s534_s9 + $0x18] sm:$0xff] %v317_v55 }
 0x148 PF: > { %s13_s12 = sadd.s32 1, %s432_s12  }
 0x149   : > { %p10_p4 = scmp.ge.s32.totalorder %s13_s12, 4  }
 0x14b   :  { %12 = sbr.rel (!%p10_p4) target bundleno = 1 (0x1), region = 62 }

</bundles_post_ra>
